<compile_context>
chip_gen: v7x
topology: tpu7x:2x2x1
jax: 0.10.0
libtpu: 0.0.40
codegen_flags: <defaults>
</compile_context>

<pallas_src>
import jax
import jax.numpy as jnp
from jax.experimental import pallas as pl
from jax.experimental.pallas import tpu as pltpu

LANE = 128


def _ae_kernel(x_ref,
               w1_ref, b1_ref,
               w2_ref, b2_ref,
               w3_ref, b3_ref,
               w4_ref, b4_ref,
               out_ref):
    bf = jnp.bfloat16
    # Encoder: Linear -> ReLU -> Linear -> ReLU   (bf16 operands, f32 accumulate)
    x = x_ref[...].astype(bf)
    h1 = jnp.dot(x, w1_ref[...], preferred_element_type=jnp.float32) + b1_ref[...]
    h1 = jnp.maximum(h1, 0.0)
    z = jnp.dot(h1.astype(bf), w2_ref[...], preferred_element_type=jnp.float32) + b2_ref[...]
    z = jnp.maximum(z, 0.0)
    # Decoder: Linear -> ReLU -> Linear -> Sigmoid
    h2 = jnp.dot(z.astype(bf), w3_ref[...], preferred_element_type=jnp.float32) + b3_ref[...]
    h2 = jnp.maximum(h2, 0.0)
    d = jnp.dot(h2.astype(bf), w4_ref[...], preferred_element_type=jnp.float32) + b4_ref[...]
    d = jax.nn.sigmoid(d)
    out_ref[...] = d.astype(out_ref.dtype)


def _round_up(n, m):
    return ((n + m - 1) // m) * m


def _pad_to(arr, shape):
    pads = [(0, s - d) for d, s in zip(arr.shape, shape)]
    return jnp.pad(arr, pads)


def deep_autoencoder_forward(x, params, *, tm_max=256):
    """x: (B, C, H, W) float32. params: dict of f32 (in,out) weights and (1,out) biases."""
    B = x.shape[0]
    flat_dim = 1
    for d in x.shape[1:]:
        flat_dim *= d
    x_f = x.reshape(B, flat_dim)  # row-major flatten == torch.flatten(start_dim=1)

    # --- Prepare kernel-side params: bf16 weights, latent padded to a lane multiple ---
    bf = jnp.bfloat16
    latent = params["w2"].shape[1]
    latent_p = max(LANE, _round_up(latent, LANE))

    w1 = params["w1"].astype(bf)
    b1 = params["b1"]
    w2 = _pad_to(params["w2"], (params["w2"].shape[0], latent_p)).astype(bf)
    b2 = _pad_to(params["b2"], (1, latent_p))
    w3 = _pad_to(params["w3"], (latent_p, params["w3"].shape[1])).astype(bf)
    b3 = params["b3"]
    w4 = params["w4"].astype(bf)
    b4 = params["b4"]

    # --- Batch tiling: TM multiple of 8 (sublane), capped at tm_max; pad B up ---
    tm = min(tm_max, _round_up(B, 8))
    B_pad = _round_up(B, tm)
    if B_pad != B:
        x_f = jnp.pad(x_f, ((0, B_pad - B), (0, 0)))

    grid = (B_pad // tm,)
    tile_spec = pl.BlockSpec((tm, flat_dim), lambda i: (i, 0))
    const = lambda shape: pl.BlockSpec(shape, lambda i: (0, 0))  # weight-resident

    out_f = pl.pallas_call(
        _ae_kernel,
        out_shape=jax.ShapeDtypeStruct((B_pad, flat_dim), x.dtype),
        grid=grid,
        in_specs=[
            tile_spec,
            const(w1.shape), const(b1.shape),
            const(w2.shape), const(b2.shape),
            const(w3.shape), const(b3.shape),
            const(w4.shape), const(b4.shape),
        ],
        out_specs=tile_spec,
        compiler_params=pltpu.CompilerParams(
            dimension_semantics=("parallel",),
            vmem_limit_bytes=32 << 20,
        ),
    )(x_f, w1, b1, w2, b2, w3, b3, w4, b4)

    return out_f[:B].reshape(x.shape)


def init_params(key, flat_dim, intermediate_dim, latent_dim):
    """Deterministic init, PyTorch-style uniform(-1/sqrt(fan_in), 1/sqrt(fan_in)), f32."""
    def linear(k, fan_in, fan_out):
        kw, kb = jax.random.split(k)
        bound = 1.0 / jnp.sqrt(fan_in)
        w = jax.random.uniform(kw, (fan_in, fan_out), jnp.float32, -bound, bound)
        b = jax.random.uniform(kb, (1, fan_out), jnp.float32, -bound, bound)
        return w, b

    k1, k2, k3, k4 = jax.random.split(key, 4)
    w1, b1 = linear(k1, flat_dim, intermediate_dim)
    w2, b2 = linear(k2, intermediate_dim, latent_dim)
    w3, b3 = linear(k3, latent_dim, intermediate_dim)
    w4, b4 = linear(k4, intermediate_dim, flat_dim)
    return dict(w1=w1, b1=b1, w2=w2, b2=b2, w3=w3, b3=b3, w4=w4, b4=b4)


def reference_forward_f32(x, params):
    """Plain-JAX f32 reference mirroring the PyTorch forward."""
    B = x.shape[0]
    x_f = x.reshape(B, -1)
    h = jax.nn.relu(x_f @ params["w1"] + params["b1"])
    z = jax.nn.relu(h @ params["w2"] + params["b2"])
    h2 = jax.nn.relu(z @ params["w3"] + params["b3"])
    d = jax.nn.sigmoid(h2 @ params["w4"] + params["b4"])
    return d.reshape(x.shape)


def reference_forward_bf16(x, params):
    """Plain-JAX reference with the same bf16-weight / f32-accumulate math as the kernel."""
    bf = jnp.bfloat16
    B = x.shape[0]
    x_f = x.reshape(B, -1).astype(bf)
    h = jax.nn.relu(jnp.dot(x_f, params["w1"].astype(bf),
                            preferred_element_type=jnp.float32) + params["b1"])
    z = jax.nn.relu(jnp.dot(h.astype(bf), params["w2"].astype(bf),
                            preferred_element_type=jnp.float32) + params["b2"])
    h2 = jax.nn.relu(jnp.dot(z.astype(bf), params["w3"].astype(bf),
                             preferred_element_type=jnp.float32) + params["b3"])
    d = jax.nn.sigmoid(jnp.dot(h2.astype(bf), params["w4"].astype(bf),
                               preferred_element_type=jnp.float32) + params["b4"])
    return d.reshape(x.shape)


if __name__ == "__main__":
    # Small shapes consistent with the module: dim=(C,H,W), flat_dim=C*H*W.
    B, C, H, W = 2, 4, 16, 16
    flat_dim = C * H * W          # 1024
    intermediate_dim = 128
    latent_dim = 32

    key = jax.random.PRNGKey(0)
    k_x, k_p = jax.random.split(key)
    x = jax.random.normal(k_x, (B, C, H, W), jnp.float32)
    params = init_params(k_p, flat_dim, intermediate_dim, latent_dim)

    out = deep_autoencoder_forward(x, params)
    out = jax.block_until_ready(out)
    assert out.shape == x.shape

    # Tight check against a reference doing the exact same bf16-weight math.
    ref_bf16 = reference_forward_bf16(x, params)
    assert jnp.allclose(out, ref_bf16, atol=2e-3, rtol=2e-3), "mismatch vs bf16 reference"

    # Looser check against the pure-f32 PyTorch-equivalent forward (bf16 weight rounding).
    ref_f32 = reference_forward_f32(x, params)
    assert jnp.allclose(out, ref_f32, atol=3e-2, rtol=3e-2), "mismatch vs f32 reference"

    print("KERNEL_OK")
</pallas_src>

<mosaic_0001>
module attributes {stable_mosaic.version = 11 : i64} {
  func.func @_ae_kernel(%arg0: i32, %arg1: memref<8x1024xf32, #tpu.memory_space<vmem>>, %arg2: memref<1024x128xbf16, #tpu.memory_space<vmem>>, %arg3: memref<1x128xf32, #tpu.memory_space<vmem>>, %arg4: memref<128x128xbf16, #tpu.memory_space<vmem>>, %arg5: memref<1x128xf32, #tpu.memory_space<vmem>>, %arg6: memref<128x128xbf16, #tpu.memory_space<vmem>>, %arg7: memref<1x128xf32, #tpu.memory_space<vmem>>, %arg8: memref<128x1024xbf16, #tpu.memory_space<vmem>>, %arg9: memref<1x1024xf32, #tpu.memory_space<vmem>>, %arg10: memref<8x1024xf32, #tpu.memory_space<vmem>>) attributes {dimension_semantics = [#tpu.dimension_semantics<parallel>], iteration_bounds = array<i64: 1>, scalar_prefetch = 0 : i64, scratch_operands = 0 : i64, tpu.core_type = #tpu.core_type<tc>, window_params = [{transform_indices = @transform_0, window_bounds = array<i64: 8, 1024>}, {pipeline_mode = #tpu.pipeline_mode<synchronous>, transform_indices = @transform_1, window_bounds = array<i64: 1024, 128>}, {pipeline_mode = #tpu.pipeline_mode<synchronous>, transform_indices = @transform_2, window_bounds = array<i64: 1, 128>}, {pipeline_mode = #tpu.pipeline_mode<synchronous>, transform_indices = @transform_3, window_bounds = array<i64: 128, 128>}, {pipeline_mode = #tpu.pipeline_mode<synchronous>, transform_indices = @transform_4, window_bounds = array<i64: 1, 128>}, {pipeline_mode = #tpu.pipeline_mode<synchronous>, transform_indices = @transform_5, window_bounds = array<i64: 128, 128>}, {pipeline_mode = #tpu.pipeline_mode<synchronous>, transform_indices = @transform_6, window_bounds = array<i64: 1, 128>}, {pipeline_mode = #tpu.pipeline_mode<synchronous>, transform_indices = @transform_7, window_bounds = array<i64: 128, 1024>}, {pipeline_mode = #tpu.pipeline_mode<synchronous>, transform_indices = @transform_8, window_bounds = array<i64: 1, 1024>}, {transform_indices = @transform_9, window_bounds = array<i64: 8, 1024>}]} {
    %c0 = arith.constant 0 : index
    %c0_0 = arith.constant 0 : index
    %0 = vector.load %arg1[%c0, %c0_0] : memref<8x1024xf32, #tpu.memory_space<vmem>>, vector<8x1024xf32>
    %1 = arith.truncf %0 : vector<8x1024xf32> to vector<8x1024xbf16>
    %c0_1 = arith.constant 0 : index
    %c0_2 = arith.constant 0 : index
    %2 = vector.load %arg2[%c0_1, %c0_2] : memref<1024x128xbf16, #tpu.memory_space<vmem>>, vector<1024x128xbf16>
    %cst = arith.constant dense<0.000000e+00> : vector<8x128xf32>
    %3 = tpu.matmul %1, %2, %cst {dimension_numbers = #tpu.dot_dimension_numbers<[1], [0], [0], [1], [0, 0, 1, 1], [], []>} : vector<8x1024xbf16>, vector<1024x128xbf16>, vector<8x128xf32> -> vector<8x128xf32>
    %c0_3 = arith.constant 0 : index
    %c0_4 = arith.constant 0 : index
    %4 = vector.load %arg3[%c0_3, %c0_4] : memref<1x128xf32, #tpu.memory_space<vmem>>, vector<1x128xf32>
    %5 = vector.broadcast %4 : vector<1x128xf32> to vector<8x128xf32>
    %6 = arith.addf %3, %5 : vector<8x128xf32>
    %cst_5 = arith.constant 0.000000e+00 : f32
    %7 = vector.broadcast %cst_5 : f32 to vector<8x128xf32>
    %8 = arith.maximumf %6, %7 : vector<8x128xf32>
    %9 = arith.truncf %8 : vector<8x128xf32> to vector<8x128xbf16>
    %c0_6 = arith.constant 0 : index
    %c0_7 = arith.constant 0 : index
    %10 = vector.load %arg4[%c0_6, %c0_7] : memref<128x128xbf16, #tpu.memory_space<vmem>>, vector<128x128xbf16>
    %cst_8 = arith.constant dense<0.000000e+00> : vector<8x128xf32>
    %11 = tpu.matmul %9, %10, %cst_8 {dimension_numbers = #tpu.dot_dimension_numbers<[1], [0], [0], [1], [0, 0, 1, 1], [], []>} : vector<8x128xbf16>, vector<128x128xbf16>, vector<8x128xf32> -> vector<8x128xf32>
    %c0_9 = arith.constant 0 : index
    %c0_10 = arith.constant 0 : index
    %12 = vector.load %arg5[%c0_9, %c0_10] : memref<1x128xf32, #tpu.memory_space<vmem>>, vector<1x128xf32>
    %13 = vector.broadcast %12 : vector<1x128xf32> to vector<8x128xf32>
    %14 = arith.addf %11, %13 : vector<8x128xf32>
    %cst_11 = arith.constant 0.000000e+00 : f32
    %15 = vector.broadcast %cst_11 : f32 to vector<8x128xf32>
    %16 = arith.maximumf %14, %15 : vector<8x128xf32>
    %17 = arith.truncf %16 : vector<8x128xf32> to vector<8x128xbf16>
    %c0_12 = arith.constant 0 : index
    %c0_13 = arith.constant 0 : index
    %18 = vector.load %arg6[%c0_12, %c0_13] : memref<128x128xbf16, #tpu.memory_space<vmem>>, vector<128x128xbf16>
    %cst_14 = arith.constant dense<0.000000e+00> : vector<8x128xf32>
    %19 = tpu.matmul %17, %18, %cst_14 {dimension_numbers = #tpu.dot_dimension_numbers<[1], [0], [0], [1], [0, 0, 1, 1], [], []>} : vector<8x128xbf16>, vector<128x128xbf16>, vector<8x128xf32> -> vector<8x128xf32>
    %c0_15 = arith.constant 0 : index
    %c0_16 = arith.constant 0 : index
    %20 = vector.load %arg7[%c0_15, %c0_16] : memref<1x128xf32, #tpu.memory_space<vmem>>, vector<1x128xf32>
    %21 = vector.broadcast %20 : vector<1x128xf32> to vector<8x128xf32>
    %22 = arith.addf %19, %21 : vector<8x128xf32>
    %cst_17 = arith.constant 0.000000e+00 : f32
    %23 = vector.broadcast %cst_17 : f32 to vector<8x128xf32>
    %24 = arith.maximumf %22, %23 : vector<8x128xf32>
    %25 = arith.truncf %24 : vector<8x128xf32> to vector<8x128xbf16>
    %c0_18 = arith.constant 0 : index
    %c0_19 = arith.constant 0 : index
    %26 = vector.load %arg8[%c0_18, %c0_19] : memref<128x1024xbf16, #tpu.memory_space<vmem>>, vector<128x1024xbf16>
    %cst_20 = arith.constant dense<0.000000e+00> : vector<8x1024xf32>
    %27 = tpu.matmul %25, %26, %cst_20 {dimension_numbers = #tpu.dot_dimension_numbers<[1], [0], [0], [1], [0, 0, 1, 1], [], []>} : vector<8x128xbf16>, vector<128x1024xbf16>, vector<8x1024xf32> -> vector<8x1024xf32>
    %c0_21 = arith.constant 0 : index
    %c0_22 = arith.constant 0 : index
    %28 = vector.load %arg9[%c0_21, %c0_22] : memref<1x1024xf32, #tpu.memory_space<vmem>>, vector<1x1024xf32>
    %29 = vector.broadcast %28 : vector<1x1024xf32> to vector<8x1024xf32>
    %30 = arith.addf %27, %29 : vector<8x1024xf32>
    %31 = arith.negf %30 : vector<8x1024xf32>
    %32 = math.exp %31 : vector<8x1024xf32>
    %cst_23 = arith.constant 1.000000e+00 : f32
    %33 = vector.broadcast %cst_23 : f32 to vector<8x1024xf32>
    %34 = arith.addf %33, %32 : vector<8x1024xf32>
    %35 = arith.divf %33, %34 : vector<8x1024xf32>
    %c0_24 = arith.constant 0 : index
    %c0_25 = arith.constant 0 : index
    %36 = vector.load %arg10[%c0_24, %c0_25] : memref<8x1024xf32, #tpu.memory_space<vmem>>, vector<8x1024xf32>
    tpu.vector_store %arg10[%c0_24, %c0_25], %35 {strides = array<i32>} : memref<8x1024xf32, #tpu.memory_space<vmem>>, vector<8x1024xf32>,
    return
  }
  func.func @transform_0(%arg0: i32) -> (i32, i32) {
    %c0_i32 = arith.constant 0 : i32
    %c0_i32_0 = arith.constant 0 : i32
    return %arg0, %c0_i32 : i32, i32
  }
  func.func @transform_1(%arg0: i32) -> (i32, i32) {
    %c0_i32 = arith.constant 0 : i32
    %c0_i32_0 = arith.constant 0 : i32
    %c0_i32_1 = arith.constant 0 : i32
    return %c0_i32, %c0_i32_0 : i32, i32
  }
  func.func @transform_2(%arg0: i32) -> (i32, i32) {
    %c0_i32 = arith.constant 0 : i32
    %c0_i32_0 = arith.constant 0 : i32
    %c0_i32_1 = arith.constant 0 : i32
    return %c0_i32, %c0_i32_0 : i32, i32
  }
  func.func @transform_3(%arg0: i32) -> (i32, i32) {
    %c0_i32 = arith.constant 0 : i32
    %c0_i32_0 = arith.constant 0 : i32
    %c0_i32_1 = arith.constant 0 : i32
    return %c0_i32, %c0_i32_0 : i32, i32
  }
  func.func @transform_4(%arg0: i32) -> (i32, i32) {
    %c0_i32 = arith.constant 0 : i32
    %c0_i32_0 = arith.constant 0 : i32
    %c0_i32_1 = arith.constant 0 : i32
    return %c0_i32, %c0_i32_0 : i32, i32
  }
  func.func @transform_5(%arg0: i32) -> (i32, i32) {
    %c0_i32 = arith.constant 0 : i32
    %c0_i32_0 = arith.constant 0 : i32
    %c0_i32_1 = arith.constant 0 : i32
    return %c0_i32, %c0_i32_0 : i32, i32
  }
  func.func @transform_6(%arg0: i32) -> (i32, i32) {
    %c0_i32 = arith.constant 0 : i32
    %c0_i32_0 = arith.constant 0 : i32
    %c0_i32_1 = arith.constant 0 : i32
    return %c0_i32, %c0_i32_0 : i32, i32
  }
  func.func @transform_7(%arg0: i32) -> (i32, i32) {
    %c0_i32 = arith.constant 0 : i32
    %c0_i32_0 = arith.constant 0 : i32
    %c0_i32_1 = arith.constant 0 : i32
    return %c0_i32, %c0_i32_0 : i32, i32
  }
  func.func @transform_8(%arg0: i32) -> (i32, i32) {
    %c0_i32 = arith.constant 0 : i32
    %c0_i32_0 = arith.constant 0 : i32
    %c0_i32_1 = arith.constant 0 : i32
    return %c0_i32, %c0_i32_0 : i32, i32
  }
  func.func @transform_9(%arg0: i32) -> (i32, i32) {
    %c0_i32 = arith.constant 0 : i32
    %c0_i32_0 = arith.constant 0 : i32
    return %arg0, %c0_i32 : i32, i32
  }
}

</mosaic_0001>

<bundles_post_ra>
// kernel: tpu_custom_call.1
= control target key start
LH: loop header
LB: loop body
LE: loop exit
PB: predicated region body
PF: predicated region fallthrough
CT: control target
= control target key end

     0   :  { %14 = vsyncpa [#allocation3], 0  ;;  %s2432_s0 = inlined_call_operand.hbm [shape: f32[8,1024], index: 0, kind: input, shape index: {}]   ;;  %s2433_s1 = inlined_call_operand.hbm [shape: bf16[1024,128], index: 1, kind: input, shape index: {}]   ;;  %s2434_s2 = inlined_call_operand.vmem [shape: f32[1,128], index: 2, kind: input, shape index: {}]   ;;  %s2435_s3 = inlined_call_operand.hbm [shape: bf16[128,128], index: 3, kind: input, shape index: {}]   ;;  %s2436_s4 = inlined_call_operand.vmem [shape: f32[1,128], index: 4, kind: input, shape index: {}]   ;;  %s2437_s5 = inlined_call_operand.hbm [shape: bf16[128,128], index: 5, kind: input, shape index: {}]   ;;  %s2438_s6 = inlined_call_operand.vmem [shape: f32[1,128], index: 6, kind: input, shape index: {}]   ;;  %s2439_s7 = inlined_call_operand.hbm [shape: bf16[128,1024], index: 7, kind: input, shape index: {}]   ;;  %s2440_s8 = inlined_call_operand.vmem [shape: f32[1,1024], index: 8, kind: input, shape index: {}]   ;;  %s2441_s9 = inlined_call_operand.hbm [shape: f32[8,1024], index: 9, kind: output, shape index: {}]  }
   0x1   :  { %15 = vsyncpa [#allocation6], 0 }
   0x2   :  { %16 = vsyncpa [#allocation9], 0 }
   0x3   :  { %17 = vsyncpa [#allocation4], 0  ;;  %s2252_s30 = smov [#allocation5]   ;;  %s2112_s13 = scalar_lea.hbm %s2433_s1, 8192 }
   0x4   :  { %s33_s10 = sshll.u32 %s2252_s30, 4  ;;  %p2113_p0 = scmp.ne.s32.totalorder %s2433_s1, %s2112_s13  ;;  %s34_s10 = int_to_ptr.vmem [resolvable:$true] %s33_s10 }
   0x5   :  { %p2116_p1 = scmp.lt.u32.totalorder %s2112_s13, %s2433_s1 }
   0x7   :  { %p2118_p2 = pnand %p2116_p1, %p2113_p0 }
   0x9   :  { %2121 = shalt.err (!%p2118_p2)
}
   0xa   :  { %s2122_s18 = scalar_lea.vmem %s34_s10, 8192  ;;  %p2127_p4 = scmp.lt.s32.totalorder %s34_s10, %s34_s10 }
   0xb   :  { %p2123_p3 = scmp.ne.s32.totalorder %s34_s10, %s2122_s18  ;;  %p2128_p5 = scmp.lt.s32.totalorder %s2122_s18, %s2122_s18 }
   0xd   :  { %p2129_p6 = por %p2128_p5, %p2127_p4 }
   0xf   :  { %p2130_p7 = pnand %p2129_p6, %p2123_p3 }
  0x11   :  { %2133 = shalt.err (!%p2130_p7)
}
  0x12   :  { %s2253_s19 = smov 64   ;;  %s2254_s20 = smov 4  }
  0x13   :  { %39 = dma.hbm_to_vmem [thread:$0]  %s2433_s1, 8192, %s34_s10, [#allocation6], %s2253_s19, %s2253_s19, %s2254_s20  }
  0x14   :  { %s2255_s23 = smov [#allocation8]   ;;  %s2256_s25 = smov [#allocation2]  }
  0x15   :  { %s61_s24 = sshll.u32 %s2255_s23, 4  ;;  %s24_s26 = sshll.u32 %s2256_s25, 4  ;;  %s62_s24 = int_to_ptr.vmem [resolvable:$true] %s61_s24  ;;  %s25_s26 = int_to_ptr.vmem [resolvable:$true] %s24_s26 }
  0x16   :  { %s2134_s29 = scalar_lea.hbm %s2437_s5, 1024 }
  0x17   :  { %p2135_p8 = scmp.ne.s32.totalorder %s2437_s5, %s2134_s29  ;;  %p2138_p9 = scmp.lt.u32.totalorder %s2134_s29, %s2437_s5 }
  0x19   :  { %p2140_p10 = pnand %p2138_p9, %p2135_p8 }
  0x1b   :  { %2143 = shalt.err (!%p2140_p10)
}
  0x1c   :  { %s2144_s1 = scalar_lea.vmem %s62_s24, 1024  ;;  %p2149_p12 = scmp.lt.s32.totalorder %s62_s24, %s62_s24 }
  0x1d   :  { %p2145_p11 = scmp.ne.s32.totalorder %s62_s24, %s2144_s1  ;;  %p2150_p13 = scmp.lt.s32.totalorder %s2144_s1, %s2144_s1 }
  0x1f   :  { %p2151_p0 = por %p2150_p13, %p2149_p12 }
  0x21   :  { %p2152_p1 = pnand %p2151_p0, %p2145_p11 }
  0x23   :  { %2155 = shalt.err (!%p2152_p1)
}
  0x24   :  { %67 = dma.hbm_to_vmem [thread:$0]  %s2437_s5, 1024, %s62_s24, [#allocation9], %s2253_s19, %s2253_s19, %s2254_s20  }
  0x25   :  { %s2156_s17 = scalar_lea.hbm %s2432_s0, 1024 }
  0x26   :  { %p2157_p2 = scmp.ne.s32.totalorder %s2432_s0, %s2156_s17  ;;  %p2160_p3 = scmp.lt.u32.totalorder %s2156_s17, %s2432_s0 }
  0x28   :  { %p2162_p4 = pnand %p2160_p3, %p2157_p2 }
  0x2a   :  { %2165 = shalt.err (!%p2162_p4)
}
  0x2b   :  { %s2166_s25 = scalar_lea.vmem %s25_s26, 1024  ;;  %p2171_p6 = scmp.lt.s32.totalorder %s25_s26, %s25_s26 }
  0x2c   :  { %p2167_p5 = scmp.ne.s32.totalorder %s25_s26, %s2166_s25  ;;  %p2172_p7 = scmp.lt.s32.totalorder %s2166_s25, %s2166_s25 }
  0x2e   :  { %p2173_p8 = por %p2172_p7, %p2171_p6 }
  0x30   :  { %p2174_p9 = pnand %p2173_p8, %p2167_p5 }
  0x32   :  { %2177 = shalt.err (!%p2174_p9)
}
  0x33   :  { %27 = dma.hbm_to_vmem [thread:$0]  %s2432_s0, 1024, %s25_s26, [#allocation3]  }
  0x34   :  { %s2257_s27 = smov [#allocation7]   ;;  %s2258_s29 = smov [#allocation10]  }
  0x35   :  { %s47_s28 = sshll.u32 %s2257_s27, 4  ;;  %s75_s30 = sshll.u32 %s2258_s29, 4  ;;  %s48_s28 = int_to_ptr.vmem [resolvable:$true] %s47_s28  ;;  %s76_s30 = int_to_ptr.vmem [resolvable:$true] %s75_s30 }
  0x36   :  { %s2178_s13 = scalar_lea.hbm %s2435_s3, 1024 }
  0x37   :  { %p2179_p10 = scmp.ne.s32.totalorder %s2435_s3, %s2178_s13  ;;  %p2182_p11 = scmp.lt.u32.totalorder %s2178_s13, %s2435_s3 }
  0x39   :  { %p2184_p12 = pnand %p2182_p11, %p2179_p10 }
  0x3b   :  { %2187 = shalt.err (!%p2184_p12)
}
  0x3c   :  { %s2188_s0 = scalar_lea.vmem %s48_s28, 1024  ;;  %p2193_p0 = scmp.lt.s32.totalorder %s48_s28, %s48_s28 }
  0x3d   :  { %p2189_p13 = scmp.ne.s32.totalorder %s48_s28, %s2188_s0  ;;  %p2194_p1 = scmp.lt.s32.totalorder %s2188_s0, %s2188_s0 }
  0x3f   :  { %p2195_p2 = por %p2194_p1, %p2193_p0 }
  0x41   :  { %p2196_p3 = pnand %p2195_p2, %p2189_p13 }
  0x43   :  { %2199 = shalt.err (!%p2196_p3)
}
  0x44   :  { %53 = dma.hbm_to_vmem [thread:$0]  %s2435_s3, 1024, %s48_s28, [#allocation6], %s2253_s19, %s2253_s19, %s2254_s20  }
  0x45   :  { %s2200_s21 = scalar_lea.hbm %s2439_s7, 8192 }
  0x46   :  { %p2201_p4 = scmp.ne.s32.totalorder %s2439_s7, %s2200_s21  ;;  %p2204_p5 = scmp.lt.u32.totalorder %s2200_s21, %s2439_s7 }
  0x48   :  { %p2206_p6 = pnand %p2204_p5, %p2201_p4 }
  0x4a   :  { %2209 = shalt.err (!%p2206_p6)
}
  0x4b   :  { %s2210_s24 = scalar_lea.vmem %s76_s30, 8192  ;;  %p2215_p8 = scmp.lt.s32.totalorder %s76_s30, %s76_s30 }
  0x4c   :  { %p2211_p7 = scmp.ne.s32.totalorder %s76_s30, %s2210_s24  ;;  %p2216_p9 = scmp.lt.s32.totalorder %s2210_s24, %s2210_s24 }
  0x4e   :  { %p2217_p10 = por %p2216_p9, %p2215_p8 }
  0x50   :  { %p2218_p11 = pnand %p2217_p10, %p2211_p7 }
  0x52   :  { %2221 = shalt.err (!%p2218_p11)
}
  0x53   :  { %s2259_s3 = smov 512   ;;  %s2260_s19 = smov 32  }
  0x54   :  { %81 = dma.hbm_to_vmem [thread:$0]  %s2439_s7, 8192, %s76_s30, [#allocation9], %s2259_s3, %s2259_s3, %s2260_s19  }
  0x55   :  { %2244 = dma.done.wait [#allocation3], 1024  }
  0x56   :  { %2245 = vsyncadd [#allocation3], 4294966272 }
  0x57   :  { %2246 = dma.done.wait [#allocation6], 9216  }
  0x58   :  { %2247 = vsyncadd [#allocation6], 4294958080 }
  0x59   :  { %2248 = dma.done.wait [#allocation9], 9216  }
  0x5a   :  { %2249 = vsyncadd [#allocation9], 4294958080  ;;  %v2000_v0 = vld [vmem:[#allocation5 + $0x40] sm:$0xff]   ;;  %v2004_v4 = vld [vmem:[#allocation5 + $0x48] sm:$0xff]   ;;  %vm2262_vm0 = vmmov 0  }
  0x5b   :  { %v2001_v1 = vld [vmem:[#allocation5 + $0xc0] sm:$0xff]   ;;  %1841 = vmatprep.subr.bf16.mxu0 %v2000_v0  ;;  %v2005_v5 = vld [vmem:[#allocation5 + $0xc8] sm:$0xff]   ;;  %v2008_v8 = vld [vmem:[#allocation5 + $0x50] sm:$0xff]  }
  0x5c   :  { %v2002_v2 = vld [vmem:[#allocation5] sm:$0xff]   ;;  %1863 = vmatprep.subr.bf16.mxu1 %v2001_v1  ;;  %v2006_v6 = vld [vmem:[#allocation5 + $0x8] sm:$0xff]   ;;  %v2009_v9 = vld [vmem:[#allocation5 + $0xd0] sm:$0xff]  }
  0x5d   :  { %v2003_v3 = vld [vmem:[#allocation5 + $0x80] sm:$0xff]   ;;  %1842 = vmatpush3.bf16.msra.mxu0 %v2002_v2  ;;  %v2007_v7 = vld [vmem:[#allocation5 + $0x88] sm:$0xff]   ;;  %v2010_v10 = vld [vmem:[#allocation5 + $0x10] sm:$0xff]  }
  0x5e   :  { %1864 = vmatpush3.bf16.msra.mxu1 %v2003_v3  ;;  %1843 = vmatprep.subr.bf16.mxu0 %v2004_v4  ;;  %v2011_v11 = vld [vmem:[#allocation5 + $0x90] sm:$0xff]   ;;  %v2012_v12 = vld [vmem:[#allocation5 + $0x58] sm:$0xff]   ;;  %v2016_v16 = vld [vmem:[#allocation5 + $0x60] sm:$0xff]  }
  0x5f   :  { %1865 = vmatprep.subr.bf16.mxu1 %v2005_v5  ;;  %v2013_v13 = vld [vmem:[#allocation5 + $0xd8] sm:$0xff]   ;;  %v2017_v17 = vld [vmem:[#allocation5 + $0xe0] sm:$0xff]   ;;  %v2020_v20 = vld [vmem:[#allocation5 + $0x68] sm:$0xff]  }
  0x60   :  { %v2014_v14 = vld [vmem:[#allocation5 + $0x18] sm:$0xff]   ;;  %v2018_v18 = vld [vmem:[#allocation5 + $0x20] sm:$0xff]   ;;  %v2021_v21 = vld [vmem:[#allocation5 + $0xe8] sm:$0xff]  }
  0x61   :  { %1844 = vmatpush3.bf16.msra.mxu0 %v2006_v6  ;;  %v2015_v15 = vld [vmem:[#allocation5 + $0x98] sm:$0xff]   ;;  %v2019_v19 = vld [vmem:[#allocation5 + $0xa0] sm:$0xff]   ;;  %v2022_v22 = vld [vmem:[#allocation5 + $0x28] sm:$0xff]  }
  0x62   :  { %1866 = vmatpush3.bf16.msra.mxu1 %v2007_v7  ;;  %1845 = vmatprep.subr.bf16.mxu0 %v2008_v8  ;;  %v2023_v23 = vld [vmem:[#allocation5 + $0xa8] sm:$0xff]   ;;  %v2024_v24 = vld [vmem:[#allocation5 + $0x70] sm:$0xff]   ;;  %v2028_v28 = vld [vmem:[#allocation5 + $0x78] sm:$0xff]  }
  0x63   :  { %1867 = vmatprep.subr.bf16.mxu1 %v2009_v9  ;;  %v2025_v25 = vld [vmem:[#allocation5 + $0xf0] sm:$0xff]   ;;  %v2029_v29 = vld [vmem:[#allocation5 + $0xf8] sm:$0xff]   ;;  %v101_v32 = vld [vmem:[#allocation2 + $0x8] sm:$0xff] }
  0x64   :  { %v2026_v26 = vld [vmem:[#allocation5 + $0x30] sm:$0xff]   ;;  %v2030_v30 = vld [vmem:[#allocation5 + $0x38] sm:$0xff]   ;;  %v100_v34 = vld [vmem:[#allocation2] sm:$0xff]  ;;  %v109_v35 = vpack.c.bf16 %v101_v32, %v101_v32 }
  0x65   :  { %1846 = vmatpush3.bf16.msra.mxu0 %v2010_v10  ;;  %v2027_v27 = vld [vmem:[#allocation5 + $0xb0] sm:$0xff]   ;;  %v2031_v31 = vld [vmem:[#allocation5 + $0xb8] sm:$0xff]   ;;  %v108_v37 = vpack.c.bf16 %v100_v34, %v100_v34  ;;  %v2032_v40 = vld [vmem:[#allocation5 + $0x140] sm:$0xff]  }
  0x66   :  { %1868 = vmatpush3.bf16.msra.mxu1 %v2011_v11  ;;  %1847 = vmatprep.subr.bf16.mxu0 %v2012_v12  ;;  %v103_v33 = vld [vmem:[#allocation2 + $0x18] sm:$0xff]  ;;  %v102_v38 = vld [vmem:[#allocation2 + $0x10] sm:$0xff]  ;;  %v2033_v41 = vld [vmem:[#allocation5 + $0x1c0] sm:$0xff]  }
  0x67   :  { %1869 = vmatprep.subr.bf16.mxu1 %v2013_v13  ;;  %v111_v36 = vpack.c.bf16 %v103_v33, %v103_v33  ;;  %v110_v39 = vpack.c.bf16 %v102_v38, %v102_v38  ;;  %667 = vmatprep.mubr.bf16.mxu0 %v109_v35  ;;  %v2034_v42 = vld [vmem:[#allocation5 + $0x100] sm:$0xff]   ;;  %v2036_v44 = vld [vmem:[#allocation5 + $0x148] sm:$0xff]   ;;  %v2040_v48 = vld [vmem:[#allocation5 + $0x150] sm:$0xff]  }
  0x68   :  { %v2035_v43 = vld [vmem:[#allocation5 + $0x180] sm:$0xff]   ;;  %v2037_v45 = vld [vmem:[#allocation5 + $0x1c8] sm:$0xff]   ;;  %v2041_v49 = vld [vmem:[#allocation5 + $0x1d0] sm:$0xff]  }
  0x69   :  { %1848 = vmatpush3.bf16.msra.mxu0 %v2014_v14  ;;  %707 = vmatprep.mubr.bf16.mxu1 %v111_v36  ;;  %v2038_v46 = vld [vmem:[#allocation5 + $0x108] sm:$0xff]   ;;  %v2042_v50 = vld [vmem:[#allocation5 + $0x110] sm:$0xff]   ;;  %v2044_v52 = vld [vmem:[#allocation5 + $0x158] sm:$0xff]  }
  0x6a   :  { %1870 = vmatpush3.bf16.msra.mxu1 %v2015_v15  ;;  %1849 = vmatprep.subr.bf16.mxu0 %v2016_v16  ;;  %v2039_v47 = vld [vmem:[#allocation5 + $0x188] sm:$0xff]   ;;  %v2043_v51 = vld [vmem:[#allocation5 + $0x190] sm:$0xff]   ;;  %v2045_v53 = vld [vmem:[#allocation5 + $0x1d8] sm:$0xff]  }
  0x6b   :  { %1871 = vmatprep.subr.bf16.mxu1 %v2017_v17  ;;  %v2046_v54 = vld [vmem:[#allocation5 + $0x118] sm:$0xff]   ;;  %v2048_v56 = vld [vmem:[#allocation5 + $0x160] sm:$0xff]   ;;  %v2052_v60 = vld [vmem:[#allocation5 + $0x168] sm:$0xff]   ;;  %v2261_v17 = vmov 0.0  }
  0x6c   :  { %v2047_v55 = vld [vmem:[#allocation5 + $0x198] sm:$0xff]   ;;  %v2049_v57 = vld [vmem:[#allocation5 + $0x1e0] sm:$0xff]   ;;  %v2053_v61 = vld [vmem:[#allocation5 + $0x1e8] sm:$0xff]  }
  0x6d   :  { %1850 = vmatpush3.bf16.msra.mxu0 %v2018_v18  ;;  %v2050_v58 = vld [vmem:[#allocation5 + $0x120] sm:$0xff]   ;;  %v2054_v62 = vld [vmem:[#allocation5 + $0x128] sm:$0xff]   ;;  %v2056_v0 = vld [vmem:[#allocation5 + $0x170] sm:$0xff]  }
  0x6e   :  { %1872 = vmatpush3.bf16.msra.mxu1 %v2019_v19  ;;  %1851 = vmatprep.subr.bf16.mxu0 %v2020_v20  ;;  %v2051_v59 = vld [vmem:[#allocation5 + $0x1a0] sm:$0xff]   ;;  %v2055_v63 = vld [vmem:[#allocation5 + $0x1a8] sm:$0xff]   ;;  %v2057_v1 = vld [vmem:[#allocation5 + $0x1f0] sm:$0xff]  }
  0x6f   :  { %1873 = vmatprep.subr.bf16.mxu1 %v2021_v21  ;;  %v2058_v2 = vld [vmem:[#allocation5 + $0x130] sm:$0xff]   ;;  %v2060_v4 = vld [vmem:[#allocation5 + $0x178] sm:$0xff]   ;;  %v105_v8 = vld [vmem:[#allocation2 + $0x28] sm:$0xff] }
  0x70   :  { %v2059_v3 = vld [vmem:[#allocation5 + $0x1b0] sm:$0xff]   ;;  %v2061_v5 = vld [vmem:[#allocation5 + $0x1f8] sm:$0xff]   ;;  %v113_v10 = vpack.c.bf16 %v105_v8, %v105_v8  ;;  %v104_v12 = vld [vmem:[#allocation2 + $0x20] sm:$0xff] }
  0x71   :  { %1852 = vmatpush3.bf16.msra.mxu0 %v2022_v22  ;;  %v2062_v6 = vld [vmem:[#allocation5 + $0x138] sm:$0xff]   ;;  %v106_v13 = vld [vmem:[#allocation2 + $0x30] sm:$0xff]  ;;  %v112_v14 = vpack.c.bf16 %v104_v12, %v104_v12  ;;  %v2064_v16 = vld [vmem:[#allocation7] sm:$0xff]  }
  0x72   :  { %1874 = vmatpush3.bf16.msra.mxu1 %v2023_v23  ;;  %1853 = vmatprep.subr.bf16.mxu0 %v2024_v24  ;;  %v2063_v7 = vld [vmem:[#allocation5 + $0x1b8] sm:$0xff]   ;;  %v114_v15 = vpack.c.bf16 %v106_v13, %v106_v13  ;;  %v2065_v18 = vld [vmem:[#allocation7 + $0x8] sm:$0xff]   ;;  %v2066_v19 = vld [vmem:[#allocation7 + $0x10] sm:$0xff]  }
  0x73   :  { %1875 = vmatprep.subr.bf16.mxu1 %v2025_v25  ;;  %v107_v9 = vld [vmem:[#allocation2 + $0x38] sm:$0xff]  ;;  %v2068_v21 = vld [vmem:[#allocation7 + $0x20] sm:$0xff]   ;;  %v2069_v22 = vld [vmem:[#allocation7 + $0x28] sm:$0xff]  }
  0x74   :  { %v115_v11 = vpack.c.bf16 %v107_v9, %v107_v9  ;;  %v2067_v20 = vld [vmem:[#allocation7 + $0x18] sm:$0xff]   ;;  %v2070_v23 = vld [vmem:[#allocation7 + $0x30] sm:$0xff]   ;;  %v2072_v25 = vld [vmem:[#allocation8] sm:$0xff]  }
  0x75   :  { %1854 = vmatpush3.bf16.msra.mxu0 %v2026_v26  ;;  %v2071_v24 = vld [vmem:[#allocation7 + $0x38] sm:$0xff]   ;;  %v2073_v26 = vld [vmem:[#allocation8 + $0x8] sm:$0xff]   ;;  %v1686_v33 = vld [vmem:[%s2434_s2] ss:$0 sm:$0xff] }
  0x76   :  { %1876 = vmatpush3.bf16.msra.mxu1 %v2027_v27  ;;  %1855 = vmatprep.subr.bf16.mxu0 %v2028_v28  ;;  %v2074_v27 = vld [vmem:[#allocation8 + $0x10] sm:$0xff]   ;;  %v2075_v28 = vld [vmem:[#allocation8 + $0x18] sm:$0xff]   ;;  %v1039_v8 = vld [vmem:[#allocation10 + $0x80] sm:$0xff] }
  0x77   :  { %1877 = vmatprep.subr.bf16.mxu1 %v2029_v29  ;;  %v2076_v29 = vld [vmem:[#allocation8 + $0x20] sm:$0xff]  }
  0x78   :  { %v1043_v9 = vld [vmem:[#allocation10 + $0xa0] sm:$0xff] }
  0x79   :  { %1856 = vmatpush3.bf16.msra.mxu0 %v2030_v30  ;;  %v2077_v30 = vld [vmem:[#allocation8 + $0x28] sm:$0xff]   ;;  %v1047_v12 = vld [vmem:[#allocation10 + $0xc0] sm:$0xff] }
  0x7a   :  { %1878 = vmatpush3.bf16.msra.mxu1 %v2031_v31  ;;  %1885 = vmatprep.subr.bf16.mxu0 %v2032_v40  ;;  %v1051_v13 = vld [vmem:[#allocation10 + $0xe0] sm:$0xff] }
  0x7b   :  { %1907 = vmatprep.subr.bf16.mxu1 %v2033_v41 }
  0x7c   :  { %668 = vmatmul.mubr.bf16.vlgmr.msra.gmra.mrb[0].mxu0 %v108_v37 }
  0x7d   :  { %708 = vmatmul.mubr.bf16.vlgmr.msra.gmra.mrb[0].mxu1 %v110_v39  ;;  %1886 = vmatpush3.bf16.msra.mxu0 %v2034_v42 }
  0x7e   :  { %1908 = vmatpush3.bf16.msra.mxu1 %v2035_v43  ;;  %1887 = vmatprep.subr.bf16.mxu0 %v2036_v44 }
  0x7f   :  { %1909 = vmatprep.subr.bf16.mxu1 %v2037_v45  ;;  %747 = vmatprep.mubr.bf16.mxu0 %v113_v10  ;;  %v1786_v10 = vcombine.high %v1039_v8, %v1043_v9 }
  0x80   :  { %787 = vmatprep.mubr.bf16.mxu1 %v115_v11  ;;  %v1785_v11 = vcombine.low %v1039_v8, %v1043_v9  ;;  %v1030_v9 = vld [vmem:[#allocation10 + $0x38] sm:$0xff] }
  0x81   :  { %1888 = vmatpush3.bf16.msra.mxu0 %v2038_v46 }
  0x82   :  { %1910 = vmatpush3.bf16.msra.mxu1 %v2039_v47  ;;  %1889 = vmatprep.subr.bf16.mxu0 %v2040_v48 }
  0x83   :  { %1911 = vmatprep.subr.bf16.mxu1 %v2041_v49 }
  0x85   :  { %1890 = vmatpush3.bf16.msra.mxu0 %v2042_v50 }
  0x86   :  { %1912 = vmatpush3.bf16.msra.mxu1 %v2043_v51  ;;  %1891 = vmatprep.subr.bf16.mxu0 %v2044_v52 }
  0x87   :  { %1913 = vmatprep.subr.bf16.mxu1 %v2045_v53 }
  0x89   :  { %1892 = vmatpush3.bf16.msra.mxu0 %v2046_v54 }
  0x8a   :  { %1914 = vmatpush3.bf16.msra.mxu1 %v2047_v55  ;;  %1893 = vmatprep.subr.bf16.mxu0 %v2048_v56 }
  0x8b   :  { %1915 = vmatprep.subr.bf16.mxu1 %v2049_v57 }
  0x8d   :  { %1894 = vmatpush3.bf16.msra.mxu0 %v2050_v58  ;;  %v2078_v58 = vld [vmem:[#allocation8 + $0x30] sm:$0xff]  }
  0x8e   :  { %1916 = vmatpush3.bf16.msra.mxu1 %v2051_v59  ;;  %1895 = vmatprep.subr.bf16.mxu0 %v2052_v60  ;;  %v2079_v59 = vld [vmem:[#allocation8 + $0x38] sm:$0xff]   ;;  %v1023_v60 = vld [vmem:[#allocation10] sm:$0xff] }
  0x8f   :  { %1917 = vmatprep.subr.bf16.mxu1 %v2053_v61  ;;  %v1027_v61 = vld [vmem:[#allocation10 + $0x20] sm:$0xff] }
  0x91   :  { %1896 = vmatpush3.bf16.msra.mxu0 %v2054_v62  ;;  %v1024_v62 = vld [vmem:[#allocation10 + $0x8] sm:$0xff] }
  0x92   :  { %1918 = vmatpush3.bf16.msra.mxu1 %v2055_v63  ;;  %1897 = vmatprep.subr.bf16.mxu0 %v2056_v0  ;;  %v1769_v63 = vcombine.low %v1023_v60, %v1027_v61  ;;  %v1770_v0 = vcombine.high %v1023_v60, %v1027_v61  ;;  %v1079_v60 = vld [vmem:[#allocation10 + $0x1c0] sm:$0xff] }
  0x93   :  { %1919 = vmatprep.subr.bf16.mxu1 %v2057_v1  ;;  %v1028_v1 = vld [vmem:[#allocation10 + $0x28] sm:$0xff]  ;;  %v1083_v61 = vld [vmem:[#allocation10 + $0x1e0] sm:$0xff] }
  0x95   :  { %1898 = vmatpush3.bf16.msra.mxu0 %v2058_v2  ;;  %v1031_v2 = vld [vmem:[#allocation10 + $0x40] sm:$0xff] }
  0x96   :  { %1920 = vmatpush3.bf16.msra.mxu1 %v2059_v3  ;;  %1899 = vmatprep.subr.bf16.mxu0 %v2060_v4  ;;  %v1035_v3 = vld [vmem:[#allocation10 + $0x60] sm:$0xff]  ;;  %v1771_v4 = vcombine.low %v1024_v62, %v1028_v1 }
  0x97   :  { %1921 = vmatprep.subr.bf16.mxu1 %v2061_v5  ;;  %v1772_v5 = vcombine.high %v1024_v62, %v1028_v1  ;;  %v1080_v62 = vld [vmem:[#allocation10 + $0x1c8] sm:$0xff]  ;;  %v1825_v1 = vcombine.low %v1079_v60, %v1083_v61 }
  0x99   :  { %1900 = vmatpush3.bf16.msra.mxu0 %v2062_v6  ;;  %v1778_v6 = vcombine.high %v1031_v2, %v1035_v3 }
  0x9a   :  { %1922 = vmatpush3.bf16.msra.mxu1 %v2063_v7  ;;  %1947 = vmatprep.subr.bf16.mxu0 %v2261_v17  ;;  %v1777_v7 = vcombine.low %v1031_v2, %v1035_v3 }
  0x9b   :  { %1967 = vmatprep.subr.bf16.mxu1 %v2261_v17 }
  0x9c   :  { %748 = vmatmul.mubr.bf16.vlgmr.msra.gmra.mrb[4].mxu0 %v112_v14  ;;  %v1794_v14 = vcombine.high %v1047_v12, %v1051_v13 }
  0x9d   :  { %788 = vmatmul.mubr.bf16.vlgmr.msra.gmra.mrb[4].mxu1 %v114_v15  ;;  %1948 = vmatpush3.bf16.msra.mxu0 %v2064_v16  ;;  %v1793_v15 = vcombine.low %v1047_v12, %v1051_v13  ;;  %v1055_v16 = vld [vmem:[#allocation10 + $0x100] sm:$0xff] }
  0x9e   :  { %1949 = vmatprep.subr.bf16.mxu0 %v2261_v17  ;;  %1963 = vmatprep.mubr.msk.bf16.mxu0 %vm2262_vm0, %v2261_v17  ;;  %v1760_v13 = vld [vmem:[%s2438_s6] ss:$0 sm:$0xff] }
  0x9f   :  { %1983 = vmatprep.mubr.msk.bf16.mxu1 %vm2262_vm0, %v2261_v17  ;;  %1968 = vmatpush3.bf16.msra.mxu1 %v2072_v25  ;;  %v1075_v25 = vld [vmem:[#allocation10 + $0x1a0] sm:$0xff] }
  0xa0   :  { %1969 = vmatprep.subr.bf16.mxu1 %v2261_v17 }
  0xa1   :  { %1950 = vmatpush3.bf16.msra.mxu0 %v2065_v18 }
  0xa2   :  { %1951 = vmatprep.subr.bf16.mxu0 %v2261_v17 }
  0xa3   :  { %1970 = vmatpush3.bf16.msra.mxu1 %v2073_v26 }
  0xa4   :  { %1971 = vmatprep.subr.bf16.mxu1 %v2261_v17 }
  0xa5   :  { %1952 = vmatpush3.bf16.msra.mxu0 %v2066_v19 }
  0xa6   :  { %1953 = vmatprep.subr.bf16.mxu0 %v2261_v17 }
  0xa7   :  { %1972 = vmatpush3.bf16.msra.mxu1 %v2074_v27 }
  0xa8   :  { %1973 = vmatprep.subr.bf16.mxu1 %v2261_v17 }
  0xa9   :  { %1954 = vmatpush3.bf16.msra.mxu0 %v2067_v20  ;;  %v1063_v20 = vld [vmem:[#allocation10 + $0x140] sm:$0xff] }
  0xaa   :  { %1955 = vmatprep.subr.bf16.mxu0 %v2261_v17 }
  0xab   :  { %1974 = vmatpush3.bf16.msra.mxu1 %v2075_v28  ;;  %v1751_v28 = vld [vmem:[%s2436_s4] ss:$0 sm:$0xff] }
  0xac   :  { %1975 = vmatprep.subr.bf16.mxu1 %v2261_v17 }
  0xad   :  { %1956 = vmatpush3.bf16.msra.mxu0 %v2068_v21  ;;  %v1067_v21 = vld [vmem:[#allocation10 + $0x160] sm:$0xff] }
  0xae   :  { %1957 = vmatprep.subr.bf16.mxu0 %v2261_v17 }
  0xaf   :  { %1976 = vmatpush3.bf16.msra.mxu1 %v2076_v29 }
  0xb0   :  { %1977 = vmatprep.subr.bf16.mxu1 %v2261_v17 }
  0xb1   :  { %1958 = vmatpush3.bf16.msra.mxu0 %v2069_v22  ;;  %v1810_v22 = vcombine.high %v1063_v20, %v1067_v21 }
  0xb2   :  { %1959 = vmatprep.subr.bf16.mxu0 %v2261_v17 }
  0xb3   :  { %1978 = vmatpush3.bf16.msra.mxu1 %v2077_v30 }
  0xb4   :  { %1979 = vmatprep.subr.bf16.mxu1 %v2261_v17 }
  0xb5   :  { %1960 = vmatpush3.bf16.msra.mxu0 %v2070_v23  ;;  %v1809_v23 = vcombine.low %v1063_v20, %v1067_v21  ;;  %v1034_v20 = vld [vmem:[#allocation10 + $0x58] sm:$0xff] }
  0xb6   :  { %1961 = vmatprep.subr.bf16.mxu0 %v2261_v17  ;;  %v1038_v21 = vld [vmem:[#allocation10 + $0x78] sm:$0xff] }
  0xb7   :  { %1980 = vmatpush3.bf16.msra.mxu1 %v2078_v58 }
  0xb8   :  { %1981 = vmatprep.subr.bf16.mxu1 %v2261_v17  ;;  %v1059_v17 = vld [vmem:[#allocation10 + $0x120] sm:$0xff] }
  0xb9   :  { %1962 = vmatpush3.bf16.msra.mxu0 %v2071_v24  ;;  %v1802_v18 = vcombine.high %v1055_v16, %v1059_v17  ;;  %v1801_v19 = vcombine.low %v1055_v16, %v1059_v17  ;;  %v1071_v24 = vld [vmem:[#allocation10 + $0x180] sm:$0xff]  ;;  %v1033_v17 = vld [vmem:[#allocation10 + $0x50] sm:$0xff] }
  0xba   :  { %1449 = vmatprep.subr.bf16.mxu0 %v1770_v0  ;;  %v1818_v26 = vcombine.high %v1071_v24, %v1075_v25  ;;  %v1817_v27 = vcombine.low %v1071_v24, %v1075_v25  ;;  %v1084_v0 = vld [vmem:[#allocation10 + $0x1e8] sm:$0xff] }
  0xbb   :  { %1982 = vmatpush3.bf16.msra.mxu1 %v2079_v59  ;;  %v1827_v2 = vcombine.low %v1080_v62, %v1084_v0  ;;  %v1828_v3 = vcombine.high %v1080_v62, %v1084_v0  ;;  %v1078_v62 = vld [vmem:[#allocation10 + $0x1b8] sm:$0xff] }
  0xbc   :  { %1490 = vmatprep.subr.bf16.mxu1 %v1772_v5  ;;  %v1029_v5 = vld [vmem:[#allocation10 + $0x30] sm:$0xff] }
 0x14f   :  { %v1857_v31 = vpop.f32.mrb[0].mxu0 }
 0x150   :  { %v1879_v32 = vpop.f32.mrb[0].mxu1  ;;  %v1858_v34 = vpop.f32.mrb[1].mxu0 }
 0x151   :  { %v1880_v35 = vpop.f32.mrb[1].mxu1  ;;  %v1859_v36 = vadd.f32 %v1858_v34, %v1857_v31  ;;  %v1860_v38 = vpop.f32.mrb[2].mxu0  ;;  %v1036_v34 = vld [vmem:[#allocation10 + $0x68] sm:$0xff] }
 0x152   :  { %v1881_v37 = vadd.f32 %v1880_v35, %v1879_v32  ;;  %v1882_v39 = vpop.f32.mrb[2].mxu1  ;;  %v1861_v40 = vpop.f32.mrb[3].mxu0 }
 0x153   :  { %v1883_v41 = vpop.f32.mrb[3].mxu1  ;;  %v670_v42 = vadd.f32 %v1859_v36, %v1686_v33  ;;  %v1032_v33 = vld [vmem:[#allocation10 + $0x48] sm:$0xff] }
 0x154   :  { %v1780_v38 = vcombine.high %v1032_v33, %v1036_v34  ;;  %v1040_v39 = vld [vmem:[#allocation10 + $0x88] sm:$0xff]  ;;  %v1779_v41 = vcombine.low %v1032_v33, %v1036_v34 }
 0x155   :  { %v710_v43 = vadd.f32 %v1881_v37, %v670_v42  ;;  %v1044_v40 = vld [vmem:[#allocation10 + $0xa8] sm:$0xff] }
 0x156   :  { %v1788_v42 = vcombine.high %v1040_v39, %v1044_v40 }
 0x16f   :  { %v1901_v44 = vpop.f32.mrb[4].mxu0 }
 0x170   :  { %v1923_v45 = vpop.f32.mrb[4].mxu1  ;;  %v1902_v46 = vpop.f32.mrb[5].mxu0 }
 0x171   :  { %v1903_v47 = vadd.f32 %v1902_v46, %v1901_v44  ;;  %v1924_v48 = vpop.f32.mrb[5].mxu1  ;;  %v1904_v49 = vpop.f32.mrb[6].mxu0  ;;  %v1052_v44 = vld [vmem:[#allocation10 + $0xe8] sm:$0xff] }
 0x172   :  { %v1925_v50 = vadd.f32 %v1924_v48, %v1923_v45  ;;  %v1926_v51 = vpop.f32.mrb[6].mxu1  ;;  %v1905_v52 = vpop.f32.mrb[7].mxu0  ;;  %v1787_v45 = vcombine.low %v1040_v39, %v1044_v40  ;;  %v1060_v48 = vld [vmem:[#allocation10 + $0x128] sm:$0xff] }
 0x173   :  { %v750_v53 = vadd.f32 %v1903_v47, %v710_v43  ;;  %v1927_v54 = vpop.f32.mrb[7].mxu1  ;;  %v1048_v43 = vld [vmem:[#allocation10 + $0xc8] sm:$0xff] }
 0x174   :  { %v1796_v46 = vcombine.high %v1048_v43, %v1052_v44  ;;  %v1056_v47 = vld [vmem:[#allocation10 + $0x108] sm:$0xff]  ;;  %v1795_v49 = vcombine.low %v1048_v43, %v1052_v44  ;;  %v1057_v43 = vld [vmem:[#allocation10 + $0x110] sm:$0xff] }
 0x175   :  { %v790_v55 = vadd.f32 %v1925_v50, %v750_v53  ;;  %v1804_v50 = vcombine.high %v1056_v47, %v1060_v48  ;;  %v1064_v51 = vld [vmem:[#allocation10 + $0x148] sm:$0xff]  ;;  %v1803_v53 = vcombine.low %v1056_v47, %v1060_v48  ;;  %v1061_v44 = vld [vmem:[#allocation10 + $0x130] sm:$0xff] }
 0x176   :  { %v1068_v52 = vld [vmem:[#allocation10 + $0x168] sm:$0xff] }
 0x177   :  { %v795_v56 = vmax.f32 %v790_v55, 0.0  ;;  %v1812_v54 = vcombine.high %v1064_v51, %v1068_v52  ;;  %v1072_v55 = vld [vmem:[#allocation10 + $0x188] sm:$0xff] }
 0x179   :  { %v796_v57 = vpack.c.bf16 %v795_v56, %v795_v56  ;;  %v1076_v56 = vld [vmem:[#allocation10 + $0x1a8] sm:$0xff] }
 0x17a   :  { %v1820_v58 = vcombine.high %v1072_v55, %v1076_v56  ;;  %v1819_v59 = vcombine.low %v1072_v55, %v1076_v56  ;;  %v1805_v55 = vcombine.low %v1057_v43, %v1061_v44 }
 0x17b   :  { %1964 = vmatmul.mubr.bf16.vlgmr.msra.gmra.mrb[8].mxu0 %v796_v57  ;;  %v1811_v57 = vcombine.low %v1064_v51, %v1068_v52  ;;  %v1065_v51 = vld [vmem:[#allocation10 + $0x150] sm:$0xff] }
 0x17c   :  { %1450 = vmatpush1.bf16.msra.mxu0 %v1769_v63  ;;  %v1826_v63 = vcombine.high %v1079_v60, %v1083_v61  ;;  %v1069_v52 = vld [vmem:[#allocation10 + $0x170] sm:$0xff]  ;;  %v1074_v61 = vld [vmem:[#allocation10 + $0x198] sm:$0xff] }
 0x17d   :  { %1451 = vmatprep.subr.bf16.mxu0 %v1778_v6  ;;  %v1026_v6 = vld [vmem:[#allocation10 + $0x18] sm:$0xff]  ;;  %v1077_v60 = vld [vmem:[#allocation10 + $0x1b0] sm:$0xff] }
 0x17e   :  { %v1776_v12 = vcombine.high %v1026_v6, %v1030_v9 }
 0x180   :  { %1452 = vmatpush1.bf16.msra.mxu0 %v1777_v7 }
 0x181   :  { %1453 = vmatprep.subr.bf16.mxu0 %v1786_v10  ;;  %v2263_v10 = vmov 0  }
 0x182   :  { %1481 = vmatprep.mubr.bf16.mxu0 %v2263_v10 }
 0x184   :  { %1454 = vmatpush1.bf16.msra.mxu0 %v1785_v11  ;;  %v1775_v11 = vcombine.low %v1026_v6, %v1030_v9  ;;  %v1086_v6 = vld [vmem:[#allocation10 + $0x1f8] sm:$0xff] }
 0x185   :  { %1455 = vmatprep.subr.bf16.mxu0 %v1794_v14 }
 0x188   :  { %1456 = vmatpush1.bf16.msra.mxu0 %v1793_v15 }
 0x189   :  { %1457 = vmatprep.subr.bf16.mxu0 %v1802_v18 }
 0x18c   :  { %1458 = vmatpush1.bf16.msra.mxu0 %v1801_v19  ;;  %v1037_v19 = vld [vmem:[#allocation10 + $0x70] sm:$0xff] }
 0x18d   :  { %1459 = vmatprep.subr.bf16.mxu0 %v1810_v22  ;;  %v1782_v25 = vcombine.high %v1033_v17, %v1037_v19 }
 0x190   :  { %1460 = vmatpush1.bf16.msra.mxu0 %v1809_v23 }
 0x191   :  { %1461 = vmatprep.subr.bf16.mxu0 %v1818_v26  ;;  %v1784_v26 = vcombine.high %v1034_v20, %v1038_v21 }
 0x194   :  { %1462 = vmatpush1.bf16.msra.mxu0 %v1817_v27  ;;  %v1041_v27 = vld [vmem:[#allocation10 + $0x90] sm:$0xff] }
 0x195   :  { %1463 = vmatprep.subr.bf16.mxu0 %v1826_v63  ;;  %v1813_v63 = vcombine.low %v1065_v51, %v1069_v52 }
 0x198   :  { %1464 = vmatpush1.bf16.msra.mxu0 %v1825_v1 }
 0x24e   :  { %v902_v29 = vpop.f32.mrb[8].mxu0 }
 0x24f   :  { %v903_v30 = vadd.f32 %v1751_v28, %v902_v29  ;;  %v1965_v31 = vpop.f32.mrb[9].mxu0  ;;  %v1045_v28 = vld [vmem:[#allocation10 + $0xb0] sm:$0xff]  ;;  %v1042_v29 = vld [vmem:[#allocation10 + $0x98] sm:$0xff] }
 0x250   :  { %v905_v32 = vpop.f32.mrb[10].mxu0  ;;  %v1781_v31 = vcombine.low %v1033_v17, %v1037_v19  ;;  %v1790_v33 = vcombine.high %v1041_v27, %v1045_v28  ;;  %v1789_v39 = vcombine.low %v1041_v27, %v1045_v28  ;;  %v1087_v17 = vld [vmem:[%s2440_s8] sm:$0xff]  ;;  %s2264_s8 = smov [#allocation11]  }
 0x251   :  { %v908_v35 = vmax.f32 %v903_v30, 0.0  ;;  %v1966_v36 = vpop.f32.mrb[11].mxu0  ;;  %v1046_v30 = vld [vmem:[#allocation10 + $0xb8] sm:$0xff]  ;;  %v1783_v32 = vcombine.low %v1034_v20, %v1038_v21  ;;  %s1675_s12 = sshll.u32 %s2264_s8, 4  ;;  %s1676_s12 = int_to_ptr.vmem [resolvable:$true] %s1675_s12 }
 0x252   :  { %v1792_v34 = vcombine.high %v1042_v29, %v1046_v30  ;;  %v1053_v36 = vld [vmem:[#allocation10 + $0xf0] sm:$0xff]  ;;  %v1791_v40 = vcombine.low %v1042_v29, %v1046_v30  ;;  %s2222_s13 = scalar_lea.vmem %s1676_s12, 1024  ;;  %p2227_p13 = scmp.lt.s32.totalorder %s1676_s12, %s1676_s12 }
 0x253   :  { %v909_v37 = vpack.c.bf16 %v908_v35, %v908_v35  ;;  %v1049_v35 = vld [vmem:[#allocation10 + $0xd0] sm:$0xff]  ;;  %p2223_p12 = scmp.ne.s32.totalorder %s1676_s12, %s2222_s13  ;;  %p2228_p0 = scmp.lt.s32.totalorder %s2222_s13, %s2222_s13 }
 0x254   :  { %v1797_v47 = vcombine.low %v1049_v35, %v1053_v36 }
 0x255   :  { %1984 = vmatmul.mubr.bf16.vlgmr.msra.gmra.mrb[8].mxu1 %v909_v37  ;;  %v1050_v37 = vld [vmem:[#allocation10 + $0xd8] sm:$0xff]  ;;  %p2229_p1 = por %p2228_p0, %p2227_p13 }
 0x256   :  { %1491 = vmatpush1.bf16.msra.mxu1 %v1771_v4  ;;  %v1025_v4 = vld [vmem:[#allocation10 + $0x10] sm:$0xff]  ;;  %1522 = vmatprep.mubr.bf16.mxu1 %v2263_v10 }
 0x257   :  { %1492 = vmatprep.subr.bf16.mxu1 %v1780_v38  ;;  %v1773_v7 = vcombine.low %v1025_v4, %v1029_v5  ;;  %v1774_v8 = vcombine.high %v1025_v4, %v1029_v5  ;;  %v1054_v38 = vld [vmem:[#allocation10 + $0xf8] sm:$0xff]  ;;  %v1085_v4 = vld [vmem:[#allocation10 + $0x1f0] sm:$0xff]  ;;  %p2230_p2 = pnand %p2229_p1, %p2223_p12 }
 0x258   :  { %v1799_v48 = vcombine.low %v1050_v37, %v1054_v38  ;;  %v1082_v5 = vld [vmem:[#allocation10 + $0x1d8] sm:$0xff] }
 0x259   :  { %1531 = vmatprep.subr.bf16.mxu0 %v1774_v8  ;;  %v1823_v8 = vcombine.low %v1074_v61, %v1078_v62 }
 0x25a   :  { %1493 = vmatpush1.bf16.msra.mxu1 %v1779_v41  ;;  %v1798_v41 = vcombine.high %v1049_v35, %v1053_v36 }
 0x25b   :  { %1494 = vmatprep.subr.bf16.mxu1 %v1788_v42  ;;  %v1800_v42 = vcombine.high %v1050_v37, %v1054_v38 }
 0x25e   :  { %1495 = vmatpush1.bf16.msra.mxu1 %v1787_v45  ;;  %v1058_v45 = vld [vmem:[#allocation10 + $0x118] sm:$0xff] }
 0x25f   :  { %1496 = vmatprep.subr.bf16.mxu1 %v1796_v46  ;;  %v1062_v46 = vld [vmem:[#allocation10 + $0x138] sm:$0xff] }
 0x260   :  { %v1807_v56 = vcombine.low %v1058_v45, %v1062_v46 }
 0x262   :  { %1497 = vmatpush1.bf16.msra.mxu1 %v1795_v49  ;;  %v1806_v49 = vcombine.high %v1057_v43, %v1061_v44 }
 0x263   :  { %1498 = vmatprep.subr.bf16.mxu1 %v1804_v50  ;;  %v1808_v50 = vcombine.high %v1058_v45, %v1062_v46 }
 0x266   :  { %1499 = vmatpush1.bf16.msra.mxu1 %v1803_v53  ;;  %v1066_v53 = vld [vmem:[#allocation10 + $0x158] sm:$0xff] }
 0x267   :  { %1500 = vmatprep.subr.bf16.mxu1 %v1812_v54  ;;  %v1070_v54 = vld [vmem:[#allocation10 + $0x178] sm:$0xff] }
 0x268   :  { %v1815_v0 = vcombine.low %v1066_v53, %v1070_v54 }
 0x26a   :  { %1501 = vmatpush1.bf16.msra.mxu1 %v1811_v57  ;;  %v1814_v57 = vcombine.high %v1065_v51, %v1069_v52 }
 0x26b   :  { %1502 = vmatprep.subr.bf16.mxu1 %v1820_v58  ;;  %v1816_v58 = vcombine.high %v1066_v53, %v1070_v54 }
 0x26e   :  { %1503 = vmatpush1.bf16.msra.mxu1 %v1819_v59  ;;  %v1073_v59 = vld [vmem:[#allocation10 + $0x190] sm:$0xff] }
 0x26f   :  { %1504 = vmatprep.subr.bf16.mxu1 %v1828_v3  ;;  %v1822_v1 = vcombine.high %v1073_v59, %v1077_v60  ;;  %v1081_v3 = vld [vmem:[#allocation10 + $0x1d0] sm:$0xff] }
 0x270   :  { %v1830_v9 = vcombine.high %v1081_v3, %v1085_v4 }
 0x272   :  { %1505 = vmatpush1.bf16.msra.mxu1 %v1827_v2  ;;  %v1824_v2 = vcombine.high %v1074_v61, %v1078_v62 }
 0x273   :  { %1572 = vmatprep.subr.bf16.mxu1 %v1776_v12  ;;  %v1831_v12 = vcombine.low %v1082_v5, %v1086_v6 }
 0x328   :  { %v1015_v14 = vpop.f32.mrb[8].mxu1 }
 0x329   :  { %v1016_v15 = vadd.f32 %v1760_v13, %v1015_v14  ;;  %v1985_v16 = vpop.f32.mrb[9].mxu1  ;;  %v1089_v13 = vlaneseq }
 0x32a   :  { %v1018_v18 = vpop.f32.mrb[10].mxu1 }
 0x32b   :  { %v1021_v22 = vmax.f32 %v1016_v15, 0.0  ;;  %v1986_v23 = vpop.f32.mrb[11].mxu1  ;;  %v1090_v14 = vshrl.u32 %v1089_v13, 7 }
 0x32d   :  { %v2411_v24 = vpack.c.bf16 %v1021_v22, %v1021_v22  ;;  %v1091_v15 = vsub.s32 0, %v1090_v14  ;;  %v1099_v16 = vsub.s32 2, %v1090_v14  ;;  %v1095_v18 = vsub.s32 1, %v1090_v14 }
 0x32e   :  { %v1103_v19 = vsub.s32 3, %v1090_v14  ;;  %v1119_v51 = vsub.s32 7, %v1090_v14 }
 0x32f   :  { %1482 = vmatmul.mubr.bf16.vlgmr.msra.gmra.mrb[12].mxu0 %v2411_v24  ;;  %1523 = vmatmul.mubr.bf16.vlgmr.msra.gmra.mrb[12].mxu1 %v2411_v24  ;;  %v1092_v20 = vrot.slane %v1087_v17, %v1091_v15  ;;  %v1100_v21 = vrot.slane %v1087_v17, %v1099_v16  ;;  %v1096_v22 = vrot.slane %v1087_v17, %v1095_v18 }
 0x330   :  { %1532 = vmatpush1.bf16.msra.mxu0 %v1773_v7  ;;  %1573 = vmatpush1.bf16.msra.mxu1 %v1775_v11  ;;  %v1821_v7 = vcombine.low %v1073_v59, %v1077_v60  ;;  %v1829_v11 = vcombine.low %v1081_v3, %v1085_v4  ;;  %v1104_v23 = vrot.slane %v1087_v17, %v1103_v19 }
 0x331   :  { %1533 = vmatprep.subr.bf16.mxu0 %v1782_v25  ;;  %1574 = vmatprep.subr.bf16.mxu1 %v1784_v26 }
 0x332   :  { %1563 = vmatprep.mubr.bf16.mxu0 %v2263_v10  ;;  %1604 = vmatprep.mubr.bf16.mxu1 %v2263_v10  ;;  %v1832_v10 = vcombine.high %v1082_v5, %v1086_v6 }
 0x334   :  { %1534 = vmatpush1.bf16.msra.mxu0 %v1781_v31  ;;  %1575 = vmatpush1.bf16.msra.mxu1 %v1783_v32 }
 0x335   :  { %1535 = vmatprep.subr.bf16.mxu0 %v1790_v33  ;;  %1576 = vmatprep.subr.bf16.mxu1 %v1792_v34 }
 0x338   :  { %1536 = vmatpush1.bf16.msra.mxu0 %v1789_v39  ;;  %1577 = vmatpush1.bf16.msra.mxu1 %v1791_v40 }
 0x339   :  { %1537 = vmatprep.subr.bf16.mxu0 %v1798_v41  ;;  %1578 = vmatprep.subr.bf16.mxu1 %v1800_v42 }
 0x33c   :  { %1538 = vmatpush1.bf16.msra.mxu0 %v1797_v47  ;;  %1579 = vmatpush1.bf16.msra.mxu1 %v1799_v48  ;;  %v1107_v48 = vsub.s32 4, %v1090_v14 }
 0x33d   :  { %1539 = vmatprep.subr.bf16.mxu0 %v1806_v49  ;;  %1580 = vmatprep.subr.bf16.mxu1 %v1808_v50  ;;  %v1115_v49 = vsub.s32 6, %v1090_v14  ;;  %v1111_v50 = vsub.s32 5, %v1090_v14 }
 0x33e   :  { %v1108_v54 = vrot.slane %v1087_v17, %v1107_v48 }
 0x340   :  { %1540 = vmatpush1.bf16.msra.mxu0 %v1805_v55  ;;  %1581 = vmatpush1.bf16.msra.mxu1 %v1807_v56  ;;  %v1116_v55 = vrot.slane %v1087_v17, %v1115_v49 }
 0x341   :  { %1541 = vmatprep.subr.bf16.mxu0 %v1814_v57  ;;  %1582 = vmatprep.subr.bf16.mxu1 %v1816_v58  ;;  %v1112_v57 = vrot.slane %v1087_v17, %v1111_v50  ;;  %v1120_v58 = vrot.slane %v1087_v17, %v1119_v51 }
 0x344   :  { %1542 = vmatpush1.bf16.msra.mxu0 %v1813_v63  ;;  %1583 = vmatpush1.bf16.msra.mxu1 %v1815_v0 }
 0x345   :  { %1543 = vmatprep.subr.bf16.mxu0 %v1822_v1  ;;  %1584 = vmatprep.subr.bf16.mxu1 %v1824_v2 }
 0x348   :  { %1544 = vmatpush1.bf16.msra.mxu0 %v1821_v7  ;;  %1585 = vmatpush1.bf16.msra.mxu1 %v1823_v8 }
 0x349   :  { %1545 = vmatprep.subr.bf16.mxu0 %v1830_v9  ;;  %1586 = vmatprep.subr.bf16.mxu1 %v1832_v10 }
 0x34c   :  { %1546 = vmatpush1.bf16.msra.mxu0 %v1829_v11  ;;  %1587 = vmatpush1.bf16.msra.mxu1 %v1831_v12 }
 0x34f   :  { %1564 = vmatmul.mubr.bf16.vlgmr.msra.gmra.mrb[16].mxu0 %v2411_v24  ;;  %1605 = vmatmul.mubr.bf16.vlgmr.msra.gmra.mrb[16].mxu1 %v2411_v24 }
 0x402   :  { %v1483_v25 = vpop.f32.mrb[12].mxu0  ;;  %v1524_v26 = vpop.f32.mrb[12].mxu1 }
 0x403   :  { %v1484_v27 = vadd.f32 %v1483_v25, %v1092_v20  ;;  %v1525_v28 = vadd.f32 %v1524_v26, %v1100_v21  ;;  %v1485_v29 = vpop.f32.mrb[13].mxu0  ;;  %v1526_v24 = vpop.f32.mrb[13].mxu1 }
 0x404   :  { %v1486_v30 = vadd.f32 %v1485_v29, %v1096_v22  ;;  %v1527_v31 = vadd.f32 %v1526_v24, %v1104_v23  ;;  %v1487_v32 = vpop.f32.mrb[14].mxu0  ;;  %v1528_v33 = vpop.f32.mrb[14].mxu1 }
 0x405   :  { %v1833_v34 = vmul.f32 -1.442695, %v1484_v27  ;;  %v1835_v35 = vmul.f32 -1.442695, %v1525_v28  ;;  %v1488_v36 = vpop.f32.mrb[15].mxu0  ;;  %v1529_v37 = vpop.f32.mrb[15].mxu1 }
 0x406   :  { %v1834_v38 = vmul.f32 -1.442695, %v1486_v30  ;;  %v1836_v39 = vmul.f32 -1.442695, %v1527_v31 }
 0x407   :  { %2080 = vpow2.f32 %v1833_v34 }
 0x408   :  { %2082 = vpow2.f32 %v1835_v35 }
 0x409   :  { %2084 = vpow2.f32 %v1834_v38 }
 0x40a   :  { %2086 = vpow2.f32 %v1836_v39 }
 0x411   :  { %v2081_v40 = vpop.eup %2080 }
 0x412   :  { %v2083_v41 = vpop.eup %2082  ;;  %v1637_v42 = vadd.f32 1.0, %v2081_v40 }
 0x413   :  { %v2085_v43 = vpop.eup %2084  ;;  %v1639_v44 = vadd.f32 1.0, %v2083_v41 }
 0x414   :  { %v2087_v45 = vpop.eup %2086  ;;  %2088 = vrcp.f32 %v1637_v42  ;;  %v1638_v46 = vadd.f32 1.0, %v2085_v43 }
 0x415   :  { %2090 = vrcp.f32 %v1639_v44  ;;  %v1640_v47 = vadd.f32 1.0, %v2087_v45 }
 0x416   :  { %2092 = vrcp.f32 %v1638_v46 }
 0x417   :  { %2094 = vrcp.f32 %v1640_v47 }
 0x41e   :  { %v2089_v52 = vpop.eup %2088 }
 0x41f   :  { %v2091_v53 = vpop.eup %2090  ;;  %1661 = vst [vmem:[#allocation11] sm:$0xff] %v2089_v52 }
 0x420   :  { %v2093_v56 = vpop.eup %2092  ;;  %1663 = vst [vmem:[#allocation11 + $0x10] sm:$0xff] %v2091_v53 }
 0x421   :  { %v2095_v59 = vpop.eup %2094  ;;  %1662 = vst [vmem:[#allocation11 + $0x8] sm:$0xff] %v2093_v56 }
 0x422   :  { %1664 = vst [vmem:[#allocation11 + $0x18] sm:$0xff] %v2095_v59  ;;  %v1565_v60 = vpop.f32.mrb[16].mxu0  ;;  %v1606_v61 = vpop.f32.mrb[16].mxu1 }
 0x423   :  { %v1566_v62 = vadd.f32 %v1565_v60, %v1108_v54  ;;  %v1607_v63 = vadd.f32 %v1606_v61, %v1116_v55  ;;  %v1567_v0 = vpop.f32.mrb[17].mxu0  ;;  %v1608_v1 = vpop.f32.mrb[17].mxu1 }
 0x424   :  { %v1568_v2 = vadd.f32 %v1567_v0, %v1112_v57  ;;  %v1609_v3 = vadd.f32 %v1608_v1, %v1120_v58  ;;  %v1569_v4 = vpop.f32.mrb[18].mxu0  ;;  %v1610_v5 = vpop.f32.mrb[18].mxu1 }
 0x425   :  { %v1837_v6 = vmul.f32 -1.442695, %v1566_v62  ;;  %v1839_v7 = vmul.f32 -1.442695, %v1607_v63  ;;  %v1570_v8 = vpop.f32.mrb[19].mxu0  ;;  %v1611_v9 = vpop.f32.mrb[19].mxu1 }
 0x426   :  { %v1838_v10 = vmul.f32 -1.442695, %v1568_v2  ;;  %v1840_v11 = vmul.f32 -1.442695, %v1609_v3 }
 0x427   :  { %2096 = vpow2.f32 %v1837_v6 }
 0x428   :  { %2098 = vpow2.f32 %v1839_v7 }
 0x429   :  { %2100 = vpow2.f32 %v1838_v10 }
 0x42a   :  { %2102 = vpow2.f32 %v1840_v11 }
 0x431   :  { %v2097_v12 = vpop.eup %2096 }
 0x432   :  { %v2099_v13 = vpop.eup %2098  ;;  %v1641_v14 = vadd.f32 1.0, %v2097_v12 }
 0x433   :  { %v2101_v15 = vpop.eup %2100  ;;  %v1643_v16 = vadd.f32 1.0, %v2099_v13 }
 0x434   :  { %v2103_v17 = vpop.eup %2102  ;;  %2104 = vrcp.f32 %v1641_v14  ;;  %v1642_v18 = vadd.f32 1.0, %v2101_v15 }
 0x435   :  { %2106 = vrcp.f32 %v1643_v16  ;;  %v1644_v19 = vadd.f32 1.0, %v2103_v17 }
 0x436   :  { %2108 = vrcp.f32 %v1642_v18 }
 0x437   :  { %2110 = vrcp.f32 %v1644_v19 }
 0x43e   :  { %v2105_v20 = vpop.eup %2104 }
 0x43f   :  { %v2107_v21 = vpop.eup %2106  ;;  %1665 = vst [vmem:[#allocation11 + $0x20] sm:$0xff] %v2105_v20 }
 0x440   :  { %v2109_v22 = vpop.eup %2108  ;;  %1667 = vst [vmem:[#allocation11 + $0x30] sm:$0xff] %v2107_v21 }
 0x441   :  { %v2111_v23 = vpop.eup %2110  ;;  %1666 = vst [vmem:[#allocation11 + $0x28] sm:$0xff] %v2109_v22 }
 0x442   :  { %1668 = vst [vmem:[#allocation11 + $0x38] sm:$0xff] %v2111_v23 }
 0x443   :  { %2233 = shalt.err (!%p2230_p2)
}
 0x444   :  { %s2234_s14 = scalar_lea.hbm %s2441_s9, 1024 }
 0x445   :  { %p2235_p3 = scmp.ne.s32.totalorder %s2441_s9, %s2234_s14  ;;  %p2238_p4 = scmp.lt.u32.totalorder %s2234_s14, %s2441_s9 }
 0x447   :  { %p2240_p5 = pnand %p2238_p4, %p2235_p3 }
 0x449   :  { %2243 = shalt.err (!%p2240_p5)
}
 0x44a   :  { %1678 = dma.vmem_to_hbm [thread:$0]  %s1676_s12, 1024, %s2441_s9, [#allocation4]  }
 0x44b   :  { %2250 = dma.done.wait [#allocation4], 1024  }
 0x44c   :  { %2251 = vsyncadd [#allocation4], 4294966272 }
 0x44d   :  { %1682 = vsyncpa [#allocation3], 1 }
 0x44e   :  { %1683 = vsyncpa [#allocation6], 1 }
 0x44f   :  { %1684 = vsyncpa [#allocation9], 1 }
 0x450   :  { %1685 = vsyncpa [#allocation4], 1 }

</bundles_post_ra>
